<compile_context>
chip_gen: v5e
topology: v5e:2x2
jax: 0.10.0
libtpu: 0.0.40
codegen_flags: <defaults>
</compile_context>

<pallas_src>
import jax
import jax.numpy as jnp
from jax.experimental import pallas as pl
from jax.experimental.pallas import tpu as pltpu


def _round_up(x, m):
    return -(-x // m) * m


def _vmem_budget():
    """Returns (vmem_limit_bytes, double_buffered_block_budget_bytes),
    generation-aware: v5e/v6e have 128 MiB physical VMEM, v7x only 64 MiB."""
    vmem_phys = 64 * 1024 * 1024  # conservative default (v7x-sized)
    try:
        info = pltpu.get_tpu_info()
        vmem_phys = int(getattr(info, "vmem_capacity_bytes", vmem_phys))
    except Exception:
        pass
    if vmem_phys >= 128 * 1024 * 1024:          # v5e / v6e
        return 64 * 1024 * 1024, 20 * 1024 * 1024
    return 32 * 1024 * 1024, 12 * 1024 * 1024   # v7x


# ---------------------------------------------------------------------------
# VPU path (small C_in): full-height vregs, chunked accumulators.
# ---------------------------------------------------------------------------
def _make_vpu_kernel(*, c_in, dim_rgb, tile_rows, chunk_rows, has_rgb):
    """Kernel ref shapes (batch dim squeezed by the BlockSpec):
      x_ref:   (C_in, tile_rows, 128)      VMEM
      w_ref:   (dim_rgb, C_in) f32         SMEM (scalar reads)
      b_ref:   (dim_rgb,) f32              SMEM
      rgb_ref: (dim_rgb, tile_rows, 128)   VMEM (only when has_rgb)
      o_ref:   (dim_rgb, tile_rows, 128)   VMEM
    """
    n_chunks = tile_rows // chunk_rows

    def kernel(x_ref, w_ref, b_ref, *rest):
        if has_rgb:
            rgb_ref, o_ref = rest
        else:
            (o_ref,) = rest

        def do_chunk(r0):
            # Load each x channel chunk ONCE, reuse for all dim_rgb outputs.
            xs = [
                x_ref[c, pl.ds(r0, chunk_rows), :].astype(jnp.float32)
                for c in range(c_in)
            ]
            for o in range(dim_rgb):
                acc = xs[0] * w_ref[o, 0]
                for c in range(1, c_in):
                    acc = acc + xs[c] * w_ref[o, c]
                acc = acc + b_ref[o]
                if has_rgb:
                    acc = acc + rgb_ref[o, pl.ds(r0, chunk_rows), :].astype(
                        jnp.float32)
                # Full-sublane, unmasked store of a (chunk_rows, 128) block.
                o_ref[o, pl.ds(r0, chunk_rows), :] = acc.astype(o_ref.dtype)

        if n_chunks <= 8:
            # Short trip count: static unroll (each iteration's stores bound
            # its own live ranges; vreg pressure stays per-chunk).
            for ci in range(n_chunks):
                do_chunk(ci * chunk_rows)
        else:
            @pl.loop(0, n_chunks)
            def _(ci):
                do_chunk(pl.multiple_of(ci * chunk_rows, chunk_rows))

    return kernel


def _choose_tile_rows(S_rows, C_in, dim_rgb, itemsize, has_rgb,
                      block_budget_bytes, B):
    """Largest 128-lane row-tile (multiple of 8 rows) under the VMEM budget,
    counting real (sublane-padded, double-buffered) block bytes, with a cap
    that keeps >= 4 grid steps for v7x megacore balance when possible."""
    sub = max(8, 32 // max(itemsize, 1))        # sublane multiple per dtype
    c_pad = _round_up(C_in, sub)
    o_pad = _round_up(dim_rgb, sub)
    per_row = itemsize * 128 * (c_pad + o_pad * (2 if has_rgb else 1)) * 2
    rows = max(8, block_budget_bytes // max(per_row, 1))
    rows = min(rows, S_rows)

    # Megacore balance (v7x: 2 TCs): aim for >= 4 grid steps if image allows.
    min_steps = 4
    if B * pl.cdiv(S_rows, rows) < min_steps and S_rows > 8:
        want_tiles = -(-min_steps // B)
        cap = max(8, (S_rows // want_tiles) // 8 * 8)
        rows = min(rows, cap)

    if rows < S_rows:
        rows = max(8, (rows // 8) * 8)          # multiple of 8 sublanes
    return int(rows)


def _run_vpu(x4, w_f32, b_f32, rgb4, block_budget, vmem_limit):
    """x4: (B, C_in, S_rows, 128); returns (B, dim_rgb, S_rows, 128)."""
    B, C_in, S_rows, _ = x4.shape
    dim_rgb = w_f32.shape[0]
    has_rgb = rgb4 is not None
    itemsize = jnp.dtype(x4.dtype).itemsize

    tile_rows = _choose_tile_rows(S_rows, C_in, dim_rgb, itemsize, has_rgb,
                                  block_budget, B)
    chunk_rows = tile_rows
    for cand in (32, 16, 8):
        if tile_rows % cand == 0:
            chunk_rows = cand
            break

    grid = (B, pl.cdiv(S_rows, tile_rows))

    x_spec = pl.BlockSpec((None, C_in, tile_rows, 128),
                          lambda b, s: (b, 0, s, 0))
    o_spec = pl.BlockSpec((None, dim_rgb, tile_rows, 128),
                          lambda b, s: (b, 0, s, 0))
    w_spec = pl.BlockSpec(memory_space=pltpu.MemorySpace.SMEM)
    b_spec = pl.BlockSpec(memory_space=pltpu.MemorySpace.SMEM)

    in_specs = [x_spec, w_spec, b_spec]
    args = [x4, w_f32, b_f32]
    if has_rgb:
        in_specs.append(pl.BlockSpec((None, dim_rgb, tile_rows, 128),
                                     lambda b, s: (b, 0, s, 0)))
        args.append(rgb4)

    S = S_rows * 128
    flops = 2 * B * S * C_in * dim_rgb
    bytes_accessed = itemsize * (B * S * C_in
                                 + B * S * dim_rgb * (2 if has_rgb else 1)
                                 ) + 4 * (dim_rgb * C_in + dim_rgb)

    kernel = _make_vpu_kernel(c_in=C_in, dim_rgb=dim_rgb, tile_rows=tile_rows,
                              chunk_rows=chunk_rows, has_rgb=has_rgb)

    return pl.pallas_call(
        kernel,
        out_shape=jax.ShapeDtypeStruct((B, dim_rgb, S_rows, 128), x4.dtype),
        grid_spec=pltpu.PrefetchScalarGridSpec(
            num_scalar_prefetch=0,
            grid=grid,
            in_specs=in_specs,
            out_specs=o_spec,
        ),
        compiler_params=pltpu.CompilerParams(
            dimension_semantics=("parallel", "parallel"),
            vmem_limit_bytes=vmem_limit,
        ),
        cost_estimate=pl.CostEstimate(
            flops=flops, transcendentals=0, bytes_accessed=bytes_accessed),
    )(*args)


# ---------------------------------------------------------------------------
# MXU path (large C_in): per-tile matmul over channels.
# ---------------------------------------------------------------------------
def _make_mxu_kernel(*, has_rgb):
    def kernel(x_ref, w_ref, b_ref, *rest):
        if has_rgb:
            rgb_ref, o_ref = rest
        else:
            (o_ref,) = rest
        out = jnp.dot(w_ref[...], x_ref[...],
                      preferred_element_type=jnp.float32)
        out = out + b_ref[...].astype(jnp.float32)      # (dim_rgb, 1) bcast
        if has_rgb:
            out = out + rgb_ref[...].astype(jnp.float32)
        o_ref[...] = out.astype(o_ref.dtype)
    return kernel


def _run_mxu(x_bcs, w2d, bias, rgb_bcs, block_budget, vmem_limit):
    """x_bcs: (B, C_in, S); returns (B, dim_rgb, S)."""
    B, C_in, S = x_bcs.shape
    dim_rgb = w2d.shape[0]
    has_rgb = rgb_bcs is not None
    itemsize = jnp.dtype(x_bcs.dtype).itemsize

    sub = max(8, 32 // max(itemsize, 1))
    c_pad = _round_up(C_in, sub)
    o_pad = _round_up(dim_rgb, sub)
    w_bytes = jnp.dtype(w2d.dtype).itemsize * o_pad * _round_up(C_in, 128)
    per_col = itemsize * (c_pad + o_pad * (2 if has_rgb else 1)) * 2
    cols = max(128, (block_budget - 2 * w_bytes) // max(per_col, 1))
    tile_s = int(min(S, cols))
    if tile_s < S:
        tile_s = max(128, (tile_s // 128) * 128)  # lane-dense multiple of 128
    grid = (B, pl.cdiv(S, tile_s))

    x_spec = pl.BlockSpec((None, C_in, tile_s), lambda b, s: (b, 0, s))
    w_spec = pl.BlockSpec((dim_rgb, C_in), lambda b, s: (0, 0))
    b_spec = pl.BlockSpec((dim_rgb, 1), lambda b, s: (0, 0))
    o_spec = pl.BlockSpec((None, dim_rgb, tile_s), lambda b, s: (b, 0, s))

    in_specs = [x_spec, w_spec, b_spec]
    args = [x_bcs, w2d, bias.reshape(dim_rgb, 1)]
    if has_rgb:
        in_specs.append(pl.BlockSpec((None, dim_rgb, tile_s),
                                     lambda b, s: (b, 0, s)))
        args.append(rgb_bcs)

    flops = 2 * B * S * C_in * dim_rgb
    bytes_accessed = itemsize * (B * S * C_in
                                 + B * S * dim_rgb * (2 if has_rgb else 1)
                                 + dim_rgb * C_in + dim_rgb)

    return pl.pallas_call(
        _make_mxu_kernel(has_rgb=has_rgb),
        out_shape=jax.ShapeDtypeStruct((B, dim_rgb, S), x_bcs.dtype),
        grid_spec=pltpu.PrefetchScalarGridSpec(
            num_scalar_prefetch=0,
            grid=grid,
            in_specs=in_specs,
            out_specs=o_spec,
        ),
        compiler_params=pltpu.CompilerParams(
            dimension_semantics=("parallel", "parallel"),
            vmem_limit_bytes=vmem_limit,
        ),
        cost_estimate=pl.CostEstimate(
            flops=flops, transcendentals=0, bytes_accessed=bytes_accessed),
    )(*args)


# ---------------------------------------------------------------------------
# Public forward (ToRGB with use_conv=True).
# ---------------------------------------------------------------------------
def to_rgb_forward(x_nchw, weight, bias, rgb_nchw=None, *, mxu_threshold=64):
    """x_nchw: (B, C_in, H, W); weight: (dim_rgb, C_in, 1, 1); bias: (dim_rgb,);
    rgb_nchw: (B, dim_rgb, H, W) or None. Returns (B, dim_rgb, H, W)."""
    B, C_in, H, W = x_nchw.shape
    dim_rgb = weight.shape[0]
    S = H * W
    w2d = weight.reshape(dim_rgb, C_in)
    has_rgb = rgb_nchw is not None
    vmem_limit, block_budget = _vmem_budget()

    if C_in >= mxu_threshold:
        # MXU path: lane-dense (C_in, tile_s) matmul blocks.
        x_bcs = x_nchw.reshape(B, C_in, S)
        rgb_bcs = rgb_nchw.reshape(B, dim_rgb, S) if has_rgb else None
        out = _run_mxu(x_bcs, w2d, bias, rgb_bcs, block_budget, vmem_limit)
        return out.reshape(B, dim_rgb, H, W)

    # VPU path: reshape the spatial axis to (S_rows, 128) for full-height
    # vregs. Pad S to a multiple of 128 if needed (padding discarded at end).
    S_pad = _round_up(S, 128)
    x_bcs = x_nchw.reshape(B, C_in, S)
    rgb_bcs = rgb_nchw.reshape(B, dim_rgb, S) if has_rgb else None
    if S_pad != S:
        x_bcs = jnp.pad(x_bcs, ((0, 0), (0, 0), (0, S_pad - S)))
        if has_rgb:
            rgb_bcs = jnp.pad(rgb_bcs, ((0, 0), (0, 0), (0, S_pad - S)))
    S_rows = S_pad // 128
    x4 = x_bcs.reshape(B, C_in, S_rows, 128)
    rgb4 = rgb_bcs.reshape(B, dim_rgb, S_rows, 128) if has_rgb else None

    # SMEM scalar reads want 32-bit weight/bias.
    w_f32 = w2d.astype(jnp.float32)
    b_f32 = bias.astype(jnp.float32)

    out4 = _run_vpu(x4, w_f32, b_f32, rgb4, block_budget, vmem_limit)
    out = out4.reshape(B, dim_rgb, S_pad)[:, :, :S]
    return out.reshape(B, dim_rgb, H, W)


def init_torgb_params(key, in_dim, dim_rgb=3):
    """Mirrors Conv2d(in_dim, dim_rgb, 1) default init + `weight *= 0.25`."""
    kw, kb = jax.random.split(key)
    wb = 1.0 / jnp.sqrt(in_dim)
    weight = jax.random.uniform(kw, (dim_rgb, in_dim, 1, 1),
                                minval=-wb, maxval=wb, dtype=jnp.float32)
    weight = weight * 0.25
    bias = jax.random.uniform(kb, (dim_rgb,), minval=-wb, maxval=wb,
                              dtype=jnp.float32)
    return weight, bias


if __name__ == "__main__":
    key = jax.random.PRNGKey(0)
    k_x, k_rgb, k_p, k_x2, k_p2, k_x3, k_rgb3, k_p3 = jax.random.split(key, 8)

    # Case 1: small C_in (typical ToRGB) -> VPU path, S multiple of 128.
    B, C_in, H, W = 2, 4, 16, 16
    dim_rgb = 3
    x = jax.random.normal(k_x, (B, C_in, H, W), dtype=jnp.float32)
    rgb = jax.random.normal(k_rgb, (B, dim_rgb, H, W), dtype=jnp.float32)
    weight, bias = init_torgb_params(k_p, C_in, dim_rgb)

    out_with = to_rgb_forward(x, weight, bias, rgb)
    out_without = to_rgb_forward(x, weight, bias, None)
    jax.block_until_ready(out_with)
    jax.block_until_ready(out_without)

    w2d = weight.reshape(dim_rgb, C_in)
    ref = jnp.einsum("oc,bchw->bohw", w2d, x) + bias[None, :, None, None]
    assert out_with.shape == (B, dim_rgb, H, W)
    assert jnp.allclose(out_with, ref + rgb, atol=1e-5, rtol=1e-5)
    assert jnp.allclose(out_without, ref, atol=1e-5, rtol=1e-5)

    # Case 2: larger C_in -> MXU path.
    B2, C2, H2, W2 = 1, 128, 8, 8
    x2 = jax.random.normal(k_x2, (B2, C2, H2, W2), dtype=jnp.float32)
    w2, b2 = init_torgb_params(k_p2, C2, dim_rgb)
    out2 = to_rgb_forward(x2, w2, b2, None)
    jax.block_until_ready(out2)
    ref2 = (jnp.einsum("oc,bchw->bohw", w2.reshape(dim_rgb, C2), x2)
            + b2[None, :, None, None])
    assert jnp.allclose(out2, ref2, atol=1e-4, rtol=1e-4)

    # Case 3: spatial size not a multiple of 128 (padding path), with rgb.
    B3, C3, H3, W3 = 1, 4, 10, 10
    x3 = jax.random.normal(k_x3, (B3, C3, H3, W3), dtype=jnp.float32)
    rgb3 = jax.random.normal(k_rgb3, (B3, dim_rgb, H3, W3), dtype=jnp.float32)
    w3, b3 = init_torgb_params(k_p3, C3, dim_rgb)
    out3 = to_rgb_forward(x3, w3, b3, rgb3)
    jax.block_until_ready(out3)
    ref3 = (jnp.einsum("oc,bchw->bohw", w3.reshape(dim_rgb, C3), x3)
            + b3[None, :, None, None] + rgb3)
    assert jnp.allclose(out3, ref3, atol=1e-5, rtol=1e-5)

    print("KERNEL_OK")
</pallas_src>

<mosaic_0001>
module attributes {stable_mosaic.version = 11 : i64} {
  func.func @kernel(%arg0: i32, %arg1: i32, %arg2: memref<1x4x2x128xf32, #tpu.memory_space<vmem>>, %arg3: memref<3x4xf32, #tpu.memory_space<smem>>, %arg4: memref<3xf32, #tpu.memory_space<smem>>, %arg5: memref<1x3x2x128xf32, #tpu.memory_space<vmem>>, %arg6: memref<1x3x2x128xf32, #tpu.memory_space<vmem>>) attributes {dimension_semantics = [#tpu.dimension_semantics<parallel>, #tpu.dimension_semantics<parallel>], iteration_bounds = array<i64: 2, 1>, scalar_prefetch = 0 : i64, scratch_operands = 0 : i64, tpu.core_type = #tpu.core_type<tc>, window_params = [{transform_indices = @transform_0, window_bounds = array<i64: 1, 4, 2, 128>}, {transform_indices = @transform_1, window_bounds = array<i64: 3, 4>}, {transform_indices = @transform_2, window_bounds = array<i64: 3>}, {transform_indices = @transform_3, window_bounds = array<i64: 1, 3, 2, 128>}, {transform_indices = @transform_4, window_bounds = array<i64: 1, 3, 2, 128>}]} {
    %c0 = arith.constant 0 : index
    %c0_0 = arith.constant 0 : index
    %c0_1 = arith.constant 0 : index
    %c0_2 = arith.constant 0 : index
    %0 = vector.load %arg2[%c0, %c0_0, %c0_1, %c0_2] : memref<1x4x2x128xf32, #tpu.memory_space<vmem>>, vector<1x1x2x128xf32>
    %1 = vector.shape_cast %0 : vector<1x1x2x128xf32> to vector<2x128xf32>
    %c0_3 = arith.constant 0 : index
    %c1 = arith.constant 1 : index
    %c0_4 = arith.constant 0 : index
    %c0_5 = arith.constant 0 : index
    %2 = vector.load %arg2[%c0_3, %c1, %c0_4, %c0_5] : memref<1x4x2x128xf32, #tpu.memory_space<vmem>>, vector<1x1x2x128xf32>
    %3 = vector.shape_cast %2 : vector<1x1x2x128xf32> to vector<2x128xf32>
    %c0_6 = arith.constant 0 : index
    %c2 = arith.constant 2 : index
    %c0_7 = arith.constant 0 : index
    %c0_8 = arith.constant 0 : index
    %4 = vector.load %arg2[%c0_6, %c2, %c0_7, %c0_8] : memref<1x4x2x128xf32, #tpu.memory_space<vmem>>, vector<1x1x2x128xf32>
    %5 = vector.shape_cast %4 : vector<1x1x2x128xf32> to vector<2x128xf32>
    %c0_9 = arith.constant 0 : index
    %c3 = arith.constant 3 : index
    %c0_10 = arith.constant 0 : index
    %c0_11 = arith.constant 0 : index
    %6 = vector.load %arg2[%c0_9, %c3, %c0_10, %c0_11] : memref<1x4x2x128xf32, #tpu.memory_space<vmem>>, vector<1x1x2x128xf32>
    %7 = vector.shape_cast %6 : vector<1x1x2x128xf32> to vector<2x128xf32>
    %c0_12 = arith.constant 0 : index
    %c0_13 = arith.constant 0 : index
    %8 = memref.load %arg3[%c0_12, %c0_13] : memref<3x4xf32, #tpu.memory_space<smem>>
    %9 = vector.broadcast %8 : f32 to vector<2x128xf32>
    %10 = arith.mulf %1, %9 : vector<2x128xf32>
    %c0_14 = arith.constant 0 : index
    %c1_15 = arith.constant 1 : index
    %11 = memref.load %arg3[%c0_14, %c1_15] : memref<3x4xf32, #tpu.memory_space<smem>>
    %12 = vector.broadcast %11 : f32 to vector<2x128xf32>
    %13 = arith.mulf %3, %12 : vector<2x128xf32>
    %14 = arith.addf %10, %13 : vector<2x128xf32>
    %c0_16 = arith.constant 0 : index
    %c2_17 = arith.constant 2 : index
    %15 = memref.load %arg3[%c0_16, %c2_17] : memref<3x4xf32, #tpu.memory_space<smem>>
    %16 = vector.broadcast %15 : f32 to vector<2x128xf32>
    %17 = arith.mulf %5, %16 : vector<2x128xf32>
    %18 = arith.addf %14, %17 : vector<2x128xf32>
    %c0_18 = arith.constant 0 : index
    %c3_19 = arith.constant 3 : index
    %19 = memref.load %arg3[%c0_18, %c3_19] : memref<3x4xf32, #tpu.memory_space<smem>>
    %20 = vector.broadcast %19 : f32 to vector<2x128xf32>
    %21 = arith.mulf %7, %20 : vector<2x128xf32>
    %22 = arith.addf %18, %21 : vector<2x128xf32>
    %c0_20 = arith.constant 0 : index
    %23 = memref.load %arg4[%c0_20] : memref<3xf32, #tpu.memory_space<smem>>
    %24 = vector.broadcast %23 : f32 to vector<2x128xf32>
    %25 = arith.addf %22, %24 : vector<2x128xf32>
    %c0_21 = arith.constant 0 : index
    %c0_22 = arith.constant 0 : index
    %c0_23 = arith.constant 0 : index
    %c0_24 = arith.constant 0 : index
    %26 = vector.load %arg5[%c0_21, %c0_22, %c0_23, %c0_24] : memref<1x3x2x128xf32, #tpu.memory_space<vmem>>, vector<1x1x2x128xf32>
    %27 = vector.shape_cast %26 : vector<1x1x2x128xf32> to vector<2x128xf32>
    %28 = arith.addf %25, %27 : vector<2x128xf32>
    %c0_25 = arith.constant 0 : index
    %c0_26 = arith.constant 0 : index
    %c0_27 = arith.constant 0 : index
    %c0_28 = arith.constant 0 : index
    %29 = vector.load %arg6[%c0_25, %c0_26, %c0_27, %c0_28] : memref<1x3x2x128xf32, #tpu.memory_space<vmem>>, vector<1x1x2x128xf32>
    %30 = vector.shape_cast %29 : vector<1x1x2x128xf32> to vector<2x128xf32>
    %31 = vector.shape_cast %28 : vector<2x128xf32> to vector<1x1x2x128xf32>
    tpu.vector_store %arg6[%c0_25, %c0_26, %c0_27, %c0_28], %31 {strides = array<i32>} : memref<1x3x2x128xf32, #tpu.memory_space<vmem>>, vector<1x1x2x128xf32>,
    %c1_29 = arith.constant 1 : index
    %c0_30 = arith.constant 0 : index
    %32 = memref.load %arg3[%c1_29, %c0_30] : memref<3x4xf32, #tpu.memory_space<smem>>
    %33 = vector.broadcast %32 : f32 to vector<2x128xf32>
    %34 = arith.mulf %1, %33 : vector<2x128xf32>
    %c1_31 = arith.constant 1 : index
    %c1_32 = arith.constant 1 : index
    %35 = memref.load %arg3[%c1_31, %c1_32] : memref<3x4xf32, #tpu.memory_space<smem>>
    %36 = vector.broadcast %35 : f32 to vector<2x128xf32>
    %37 = arith.mulf %3, %36 : vector<2x128xf32>
    %38 = arith.addf %34, %37 : vector<2x128xf32>
    %c1_33 = arith.constant 1 : index
    %c2_34 = arith.constant 2 : index
    %39 = memref.load %arg3[%c1_33, %c2_34] : memref<3x4xf32, #tpu.memory_space<smem>>
    %40 = vector.broadcast %39 : f32 to vector<2x128xf32>
    %41 = arith.mulf %5, %40 : vector<2x128xf32>
    %42 = arith.addf %38, %41 : vector<2x128xf32>
    %c1_35 = arith.constant 1 : index
    %c3_36 = arith.constant 3 : index
    %43 = memref.load %arg3[%c1_35, %c3_36] : memref<3x4xf32, #tpu.memory_space<smem>>
    %44 = vector.broadcast %43 : f32 to vector<2x128xf32>
    %45 = arith.mulf %7, %44 : vector<2x128xf32>
    %46 = arith.addf %42, %45 : vector<2x128xf32>
    %c1_37 = arith.constant 1 : index
    %47 = memref.load %arg4[%c1_37] : memref<3xf32, #tpu.memory_space<smem>>
    %48 = vector.broadcast %47 : f32 to vector<2x128xf32>
    %49 = arith.addf %46, %48 : vector<2x128xf32>
    %c0_38 = arith.constant 0 : index
    %c1_39 = arith.constant 1 : index
    %c0_40 = arith.constant 0 : index
    %c0_41 = arith.constant 0 : index
    %50 = vector.load %arg5[%c0_38, %c1_39, %c0_40, %c0_41] : memref<1x3x2x128xf32, #tpu.memory_space<vmem>>, vector<1x1x2x128xf32>
    %51 = vector.shape_cast %50 : vector<1x1x2x128xf32> to vector<2x128xf32>
    %52 = arith.addf %49, %51 : vector<2x128xf32>
    %c0_42 = arith.constant 0 : index
    %c1_43 = arith.constant 1 : index
    %c0_44 = arith.constant 0 : index
    %c0_45 = arith.constant 0 : index
    %53 = vector.load %arg6[%c0_42, %c1_43, %c0_44, %c0_45] : memref<1x3x2x128xf32, #tpu.memory_space<vmem>>, vector<1x1x2x128xf32>
    %54 = vector.shape_cast %53 : vector<1x1x2x128xf32> to vector<2x128xf32>
    %55 = vector.shape_cast %52 : vector<2x128xf32> to vector<1x1x2x128xf32>
    tpu.vector_store %arg6[%c0_42, %c1_43, %c0_44, %c0_45], %55 {strides = array<i32>} : memref<1x3x2x128xf32, #tpu.memory_space<vmem>>, vector<1x1x2x128xf32>,
    %c2_46 = arith.constant 2 : index
    %c0_47 = arith.constant 0 : index
    %56 = memref.load %arg3[%c2_46, %c0_47] : memref<3x4xf32, #tpu.memory_space<smem>>
    %57 = vector.broadcast %56 : f32 to vector<2x128xf32>
    %58 = arith.mulf %1, %57 : vector<2x128xf32>
    %c2_48 = arith.constant 2 : index
    %c1_49 = arith.constant 1 : index
    %59 = memref.load %arg3[%c2_48, %c1_49] : memref<3x4xf32, #tpu.memory_space<smem>>
    %60 = vector.broadcast %59 : f32 to vector<2x128xf32>
    %61 = arith.mulf %3, %60 : vector<2x128xf32>
    %62 = arith.addf %58, %61 : vector<2x128xf32>
    %c2_50 = arith.constant 2 : index
    %c2_51 = arith.constant 2 : index
    %63 = memref.load %arg3[%c2_50, %c2_51] : memref<3x4xf32, #tpu.memory_space<smem>>
    %64 = vector.broadcast %63 : f32 to vector<2x128xf32>
    %65 = arith.mulf %5, %64 : vector<2x128xf32>
    %66 = arith.addf %62, %65 : vector<2x128xf32>
    %c2_52 = arith.constant 2 : index
    %c3_53 = arith.constant 3 : index
    %67 = memref.load %arg3[%c2_52, %c3_53] : memref<3x4xf32, #tpu.memory_space<smem>>
    %68 = vector.broadcast %67 : f32 to vector<2x128xf32>
    %69 = arith.mulf %7, %68 : vector<2x128xf32>
    %70 = arith.addf %66, %69 : vector<2x128xf32>
    %c2_54 = arith.constant 2 : index
    %71 = memref.load %arg4[%c2_54] : memref<3xf32, #tpu.memory_space<smem>>
    %72 = vector.broadcast %71 : f32 to vector<2x128xf32>
    %73 = arith.addf %70, %72 : vector<2x128xf32>
    %c0_55 = arith.constant 0 : index
    %c2_56 = arith.constant 2 : index
    %c0_57 = arith.constant 0 : index
    %c0_58 = arith.constant 0 : index
    %74 = vector.load %arg5[%c0_55, %c2_56, %c0_57, %c0_58] : memref<1x3x2x128xf32, #tpu.memory_space<vmem>>, vector<1x1x2x128xf32>
    %75 = vector.shape_cast %74 : vector<1x1x2x128xf32> to vector<2x128xf32>
    %76 = arith.addf %73, %75 : vector<2x128xf32>
    %c0_59 = arith.constant 0 : index
    %c2_60 = arith.constant 2 : index
    %c0_61 = arith.constant 0 : index
    %c0_62 = arith.constant 0 : index
    %77 = vector.load %arg6[%c0_59, %c2_60, %c0_61, %c0_62] : memref<1x3x2x128xf32, #tpu.memory_space<vmem>>, vector<1x1x2x128xf32>
    %78 = vector.shape_cast %77 : vector<1x1x2x128xf32> to vector<2x128xf32>
    %79 = vector.shape_cast %76 : vector<2x128xf32> to vector<1x1x2x128xf32>
    tpu.vector_store %arg6[%c0_59, %c2_60, %c0_61, %c0_62], %79 {strides = array<i32>} : memref<1x3x2x128xf32, #tpu.memory_space<vmem>>, vector<1x1x2x128xf32>,
    return
  }
  func.func @transform_0(%arg0: i32, %arg1: i32) -> (i32, i32, i32, i32) {
    %c0_i32 = arith.constant 0 : i32
    %c0_i32_0 = arith.constant 0 : i32
    %c0_i32_1 = arith.constant 0 : i32
    return %arg0, %c0_i32, %arg1, %c0_i32_0 : i32, i32, i32, i32
  }
  func.func @transform_1(%arg0: i32, %arg1: i32) -> (i32, i32) {
    %c0_i32 = arith.constant 0 : i32
    %c0_i32_0 = arith.constant 0 : i32
    %c0_i32_1 = arith.constant 0 : i32
    return %c0_i32, %c0_i32_0 : i32, i32
  }
  func.func @transform_2(%arg0: i32, %arg1: i32) -> i32 {
    %c0_i32 = arith.constant 0 : i32
    %c0_i32_0 = arith.constant 0 : i32
    return %c0_i32 : i32
  }
  func.func @transform_3(%arg0: i32, %arg1: i32) -> (i32, i32, i32, i32) {
    %c0_i32 = arith.constant 0 : i32
    %c0_i32_0 = arith.constant 0 : i32
    %c0_i32_1 = arith.constant 0 : i32
    return %arg0, %c0_i32, %arg1, %c0_i32_0 : i32, i32, i32, i32
  }
  func.func @transform_4(%arg0: i32, %arg1: i32) -> (i32, i32, i32, i32) {
    %c0_i32 = arith.constant 0 : i32
    %c0_i32_0 = arith.constant 0 : i32
    %c0_i32_1 = arith.constant 0 : i32
    return %arg0, %c0_i32, %arg1, %c0_i32_0 : i32, i32, i32, i32
  }
}

</mosaic_0001>

<bundles_post_ra>
// kernel: tpu_custom_call.1
= control target key start
LH: loop header
LB: loop body
LE: loop exit
PB: predicated region body
PF: predicated region fallthrough
CT: control target
= control target key end

     0   :  { %s1074_s0 = inlined_call_operand.hbm [shape: f32[2,4,2,128], index: 0, kind: input, shape index: {}]   ;;  %s1075_s1 = inlined_call_operand.hbm [shape: f32[3,4], index: 1, kind: input, shape index: {}]   ;;  %s1076_s2 = inlined_call_operand.vmem [shape: f32[3], index: 2, kind: input, shape index: {}]   ;;  %s1077_s3 = inlined_call_operand.hbm [shape: f32[2,3,2,128], index: 3, kind: input, shape index: {}]   ;;  %s1078_s4 = inlined_call_operand.hbm [shape: f32[2,3,2,128], index: 4, kind: output, shape index: {}]  }
   0x1   :  { %1080 = sst [smem:[#allocation18_spill]] %s1074_s0 }
   0x2   :  { %1081 = sst [smem:[#allocation19_spill]] %s1075_s1 }
   0x3   :  { %1082 = sst [smem:[#allocation20_spill]] %s1076_s2 }
   0x4   :  { %9 = vsyncpa [#allocation3], 0 }
   0x5   :  { %11 = vsyncpa [#allocation3 + $0x1], 0 }
   0x6   :  { %12 = vsyncpa [#allocation5], 0 }
   0x7   :  { %13 = vsyncpa [#allocation6], 0 }
   0x8   :  { %14 = vsyncpa [#allocation10], 0 }
   0x9   :  { %16 = vsyncpa [#allocation10 + $0x1], 0 }
   0xa   :  { %17 = vsyncpa [#allocation4], 0 }
   0xb   :  { %19 = vsyncpa [#allocation4 + $0x1], 0  ;;  %s883_s15 = smov 0   ;;  %s885_s16 = smov 0  }
   0xc   :  { %s887_s17 = smov 0   ;;  %s889_s18 = smov 0  }
   0xd   :  { %s891_s19 = smov 0   ;;  %s893_s20 = smov 0  }
   0xe LB: > { %s532_s21 = sadd.s32 4294967295, %s850_s20   ;;  %s533_s22 = sadd.s32 4294967294, %s850_s20   ;;  %s850_s20 = sphi %s893_s20, %s25_s20   ;;  %s846_s19 = sphi %s891_s19, %s1099_s19   ;;  %s842_s18 = sphi %s889_s18, %s1098_s18   ;;  %s838_s17 = sphi %s887_s17, %s1097_s17   ;;  %s834_s16 = sphi %s885_s16, %s1096_s16   ;;  %s830_s15 = sphi %s883_s15, %s1095_s15  }
   0xf   : > { %s46_s23 = sadd.s32 1, %s838_s17  ;;  %p53_p0 = scmp.ne.s32.totalorder %s838_s17, %s834_s16 }
  0x10   : > { %p54_p1 = scmp.eq.s32.totalorder %s850_s20, 0  ;;  %p59_p2 = scmp.ne.s32.totalorder %s834_s16, %s830_s15 }
  0x11   : > { %p921_p3 = scmp.eq.s32.totalorder %s532_s21, 0  ;;  %p155_p4 = scmp.eq.s32.totalorder %s532_s21, 1 }
  0x12   : > { %p925_p5 = por %p54_p1, %p53_p0  ;;  %p161_p6 = scmp.eq.s32.totalorder %s533_s22, 1 }
  0x13   : > { %p931_p7 = por %p921_p3, %p59_p2  ;;  %p935_p8 = por %p155_p4, %p53_p0 }
  0x14   : > { %p939_p9 = por %p161_p6, %p59_p2  ;;  %p534_p10 = scmp.ge.s32.totalorder %s850_s20, 1 }
  0x15   : > { %p168_p11 = scmp.lt.s32.totalorder %s850_s20, 3  ;;  %s1088_s1 = sld [smem:[#allocation19_spill]] }
  0x16   : > { %p537_p13 = scmp.ge.s32.totalorder %s850_s20, 2  ;;  %p608_p0 = scmp.lt.s32.totalorder %s850_s20, 2 }
  0x17   : > { %p948_p12 = pnand %p534_p10, %p168_p11  ;;  %s1090_s2 = sld [smem:[#allocation20_spill]] }
  0x18   : > { %p961_p2 = pnand %p608_p0, %p925_p5  ;;  %s852_s11 = smov [#allocation7]  }
  0x19   : > { %p588_p1 = pneg %p948_p12  ;;  %s853_s12 = smov [#allocation8]  }
  0x1a   : > { %s37_s13 = sadd.s32 1, %s846_s19  ;;  %s969_s14 = sand.u32 1, %s838_s17  }
  0x1b   : > { %s180_s5 = sshll.u32 %s1088_s1, 4  ;;  %p589_p4 = pnand %p588_p1, %p921_p3  ;;  %s181_s5 = int_to_ptr.hbm [resolvable:$true] %s180_s5 }
  0x1c   : > { %p39_p6 = scmp.ge.s32.totalorder %s37_s13, 2  ;;  %s538_s21 = sshll.u32 %s969_s14, 3 }
  0x1d   : > { %s190_s9 = sshll.u32 %s1090_s2, 4  ;;  %s569_s22 = sshll.u32 %s846_s19, 3  ;;  %s191_s9 = int_to_ptr.vmem [resolvable:$true] %s190_s9 }
  0x1e   : > { %591 = dma.hbm_to_smem (!%p589_p4), %s181_s5, 64, %s852_s11, [#allocation5]  }
  0x1f   : > { %594 = dma.vmem_to_smem (!%p589_p4), %s191_s9, 16, %s853_s12, [#allocation6]  }
  0x20   : > { %s1101_s13 = smov (%p39_p6, %s37_s13), 0  ;;  %s1093_s0 = sld [smem:[#allocation18_spill]] }
  0x21   : > { %1092 = sst [smem:[#allocation17_spill]] %s1101_s13  ;;  %s41_s5 = ssub.s32 %s846_s19, %s1101_s13 }
  0x22   : > { %p44_p5 = scmp.eq.s32.totalorder %s41_s5, 0  ;;  %s205_s8 = scalar_lea.vmem [#allocation2], %s538_s21 }
  0x23   : > { %s214_s9 = sshll.u32 %s205_s8, 4  ;;  %s202_s12 = scalar_lea.sflag [#allocation3], %s969_s14  ;;  %s215_s9 = int_to_ptr.vmem [resolvable:$true] %s214_s9 }
  0x24   : > { %s983_s11 = scalar_select %p44_p5, %s838_s17, %s46_s23  }
  0x25   : > { %s854_s1 = smov 32   ;;  %s855_s2 = smov 2  }
  0x26   : > { %s211_s30 = scalar_lea.hbm %s1093_s0, %s569_s22  ;;  %s570_s25 = smul.u32 6, %s969_s14 }
  0x27   : > { %s212_s7 = sshll.u32 %s211_s30, 4  ;;  %s571_s29 = smul.u32 6, %s846_s19  ;;  %s213_s7 = int_to_ptr.hbm [resolvable:$true] %s212_s7 }
  0x28   : > { %598 = dma.hbm_to_vmem [thread:$0]  (!%p961_p2), %s213_s7, 128, %s215_s9, %s202_s12, %s854_s1, %s854_s1, %s855_s2  }
  0x29   : > { %s234_s30 = scalar_lea.hbm %s1077_s3, %s571_s29  ;;  %s228_s5 = scalar_lea.vmem [#allocation9], %s570_s25 }
  0x2a   : > { %s237_s21 = sshll.u32 %s228_s5, 4  ;;  %s235_s13 = sshll.u32 %s234_s30, 4  ;;  %s238_s21 = int_to_ptr.vmem [resolvable:$true] %s237_s21  ;;  %s236_s13 = int_to_ptr.hbm [resolvable:$true] %s235_s13 }
  0x2b   : > { %s225_s8 = scalar_lea.sflag [#allocation10], %s969_s14  ;;  %249 = sbr.rel (%p948_p12) target bundleno = 93 (0x5d), region = 36 }
  0x2c   : > { %601 = dma.hbm_to_vmem [thread:$0]  (!%p961_p2), %s236_s13, 96, %s238_s21, %s225_s8, %s854_s1, %s854_s1, %s855_s2  }
  0x2d   : > { %s999_s23 = sand.u32 (!%p948_p12), 1, %s834_s16  }
  0x2e   : > { %s543_s7 = sshll.u32 (!%p948_p12), %s999_s23, 3  ;;  %s252_s0 = scalar_lea.sflag (!%p948_p12), [#allocation3], %s999_s23 }
  0x2f   : > { %s255_s9 = scalar_lea.vmem (!%p948_p12), [#allocation2], %s543_s7 }
  0x30   : > { %809 = dma.done.wait (%p931_p7), %s252_s0, 128  }
  0x31   : > { %811 = vsyncadd (%p931_p7), %s252_s0, 4294967168 }
  0x32   : > { %813 = dma.done.wait (%p921_p3), [#allocation5], 64  }
  0x33   : > { %815 = vsyncadd (%p921_p3), [#allocation5], 4294967232 }
  0x34   : > { %817 = dma.done.wait (%p921_p3), [#allocation6], 16  }
  0x35   : > { %819 = vsyncadd (%p921_p3), [#allocation6], 4294967280  ;;  %s572_s1 = smul.u32 6, %s999_s23  ;;  %s272_s2 = scalar_lea.sflag [#allocation10], %s999_s23 }
  0x37   : > { %s1019_s6 = scalar_lea.vmem [#allocation9], %s572_s1 }
  0x38   : > { %821 = dma.done.wait (%p931_p7), %s272_s2, 96  }
  0x39   : > { %823 = vsyncadd (%p931_p7), %s272_s2, 4294967200 }
  0x3a   : > { %281 = sfence }
  0x3b   : > { %s314_s10 = sld [smem:[#allocation7]]  ;;  %v307_v0 = vld [vmem:[%s255_s9] sm:$0x3]  ;;  %v546_v1 = vld [vmem:[%s255_s9 + $0x2] sm:$0x3]  ;;  %s306_s2 = scalar_lea.vmem [#allocation11], %s572_s1 }
  0x3c   : > { %s549_s13 = sld [smem:[#allocation7 + $0x1]]  ;;  %v547_v2 = vld [vmem:[%s255_s9 + $0x4] sm:$0x3]  ;;  %v548_v4 = vld [vmem:[%s255_s9 + $0x6] sm:$0x3]  ;;  %s573_s9 = smul.u32 6, %s842_s18 }
  0x3d   : > { %s550_s14 = sld [smem:[#allocation7 + $0x2]]  ;;  %v332_v23 = vld [vmem:[%s1019_s6] sm:$0x3]  ;;  %v557_v38 = vld [vmem:[%s1019_s6 + $0x2] sm:$0x3]  ;;  %s395_s18 = sshll.u32 %s306_s2, 4  ;;  %s396_s18 = int_to_ptr.vmem [resolvable:$true] %s395_s18 }
  0x3e   : > { %s551_s24 = sld [smem:[#allocation7 + $0x3]]  ;;  %v564_v46 = vld [vmem:[%s1019_s6 + $0x4] sm:$0x3]  ;;  %s382_s1 = scalar_lea.sflag [#allocation4], %s999_s23 }
  0x3f   : > { %s1025_s12 = sld [smem:[#allocation8]] }
  0x40   : > { %s552_s25 = sld [smem:[#allocation7 + $0x80]] }
  0x41   : > { %v315_v3 = vstv %s314_s10  ;;  %s553_s29 = sld [smem:[#allocation7 + $0x81]] }
  0x42   : > { %v316_v5 = vmul.f32 %v315_v3, %v307_v0  ;;  %v318_v6 = vstv %s549_s13  ;;  %s554_s22 = sld [smem:[#allocation7 + $0x82]] }
  0x43   : > { %v319_v7 = vmul.f32 %v546_v1, %v318_v6  ;;  %v322_v8 = vstv %s550_s14  ;;  %s555_s26 = sld [smem:[#allocation7 + $0x83]]  ;;  %s394_s14 = scalar_lea.hbm %s1078_s4, %s573_s9 }
  0x44   : > { %v323_v9 = vmul.f32 %v547_v2, %v322_v8  ;;  %v326_v10 = vstv %s551_s24  ;;  %s1027_s30 = sld [smem:[#allocation8 + $0x1]]  ;;  %s397_s24 = sshll.u32 %s394_s14, 4  ;;  %s398_s24 = int_to_ptr.hbm [resolvable:$true] %s397_s24 }
  0x45   : > { %v320_v11 = vadd.f32 %v319_v7, %v316_v5  ;;  %v327_v12 = vmul.f32 %v548_v4, %v326_v10  ;;  %s559_s5 = sld [smem:[#allocation7 + $0x100]]  ;;  %v330_v17 = vstv %s1025_s12  ;;  %s770_s12 = sshra.s32 %s398_s24, 4  ;;  %s771_s12 = int_to_ptr.hbm [resolvable:$true] %s770_s12 }
  0x46   : > { %v336_v13 = vstv %s552_s25  ;;  %s560_s21 = sld [smem:[#allocation7 + $0x101]]  ;;  %s772_s25 = scalar_lea.hbm %s771_s12, 6 }
  0x47   : > { %v324_v14 = vadd.f32 %v323_v9, %v320_v11  ;;  %v337_v15 = vmul.f32 %v336_v13, %v307_v0  ;;  %v339_v16 = vstv %s553_s29  ;;  %s561_s8 = sld [smem:[#allocation7 + $0x102]]  ;;  %p773_p3 = scmp.ne.s32.totalorder %s771_s12, %s772_s25 }
  0x48   : > { %v340_v18 = vmul.f32 %v546_v1, %v339_v16  ;;  %v343_v19 = vstv %s554_s22  ;;  %s562_s7 = sld [smem:[#allocation7 + $0x103]]  ;;  %p777_p11 = scmp.lt.s32.totalorder %s771_s12, %s1078_s4 }
  0x49   : > { %v328_v20 = vadd.f32 %v327_v12, %v324_v14  ;;  %v344_v21 = vmul.f32 %v547_v2, %v343_v19  ;;  %v347_v22 = vstv %s555_s26  ;;  %s563_s0 = sld [smem:[#allocation8 + $0x2]]  ;;  %p774_p7 = pnand %p773_p3, %p935_p8 }
  0x4a   : > { %v341_v24 = vadd.f32 %v340_v18, %v337_v15  ;;  %v348_v25 = vmul.f32 %v548_v4, %v347_v22  ;;  %v351_v32 = vstv %s1027_s30  ;;  %s776_s26 = scalar_lea.hbm %s1078_s4, 12 }
  0x4b   : > { %v331_v26 = vadd.f32 %v330_v17, %v328_v20  ;;  %v359_v27 = vstv %s559_s5  ;;  %p775_p10 = pneg %p774_p7  ;;  %p778_p12 = scmp.lt.s32.totalorder %s776_s26, %s772_s25 }
  0x4c   : > { %v345_v28 = vadd.f32 %v344_v21, %v341_v24  ;;  %v360_v29 = vmul.f32 %v359_v27, %v307_v0  ;;  %v362_v30 = vstv %s560_s21 }
  0x4d   : > { %v333_v31 = vadd.f32 %v332_v23, %v331_v26  ;;  %v363_v33 = vmul.f32 %v546_v1, %v362_v30  ;;  %v366_v34 = vstv %s561_s8  ;;  %p779_p0 = por %p778_p12, %p777_p11 }
  0x4e   : > { %v349_v35 = vadd.f32 %v348_v25, %v345_v28  ;;  %v367_v36 = vmul.f32 %v547_v2, %v366_v34  ;;  %v370_v37 = vstv %s562_s7 }
  0x4f   : > { %334 = vst [vmem:[%s306_s2] sm:$0x3] %v333_v31  ;;  %v364_v39 = vadd.f32 %v363_v33, %v360_v29  ;;  %v371_v40 = vmul.f32 %v548_v4, %v370_v37  ;;  %v374_v44 = vstv %s563_s0  ;;  %p780_p1 = pnand %p779_p0, %p775_p10 }
  0x50   : > { %v352_v41 = vadd.f32 %v351_v32, %v349_v35 }
  0x51   : > { %v368_v42 = vadd.f32 %v367_v36, %v364_v39 }
  0x52   : > { %v355_v43 = vadd.f32 %v557_v38, %v352_v41 }
  0x53   : > { %v372_v45 = vadd.f32 %v371_v40, %v368_v42 }
  0x54   : > { %558 = vst [vmem:[%s306_s2 + $0x2] sm:$0x3] %v355_v43 }
  0x55   : > { %v375_v47 = vadd.f32 %v374_v44, %v372_v45 }
  0x57   : > { %v378_v48 = vadd.f32 %v564_v46, %v375_v47 }
  0x59   : > { %565 = vst [vmem:[%s306_s2 + $0x4] sm:$0x3] %v378_v48 }
  0x5a   : > { %783 = shalt.err (!%p780_p1)
}
  0x5b   : > { %s856_s23 = smov 32   ;;  %s857_s5 = smov 2  }
  0x5c   : > { %586 = dma.vmem_to_hbm [thread:$0]  (%p935_p8), %s396_s18, 96, %s398_s24, %s382_s1, %s856_s23, %s856_s23, %s857_s5  }
  0x5d PF: > { %s412_s21 = sand.u32 1, %s830_s15   ;;  %p603_p2 = pnand %p537_p13, %p939_p9 }
  0x5e   : > { %s413_s8 = scalar_lea.sflag [#allocation4], %s412_s21 }
  0x5f   : > { %p604_p4 = pneg %p603_p2 }
  0x61   : > { %825 = dma.done.wait (%p604_p4), %s413_s8, 96  }
  0x62   : > { %827 = vsyncadd (%p604_p4), %s413_s8, 4294967200  ;;  %s25_s20 = sadd.s32 1, %s850_s20   ;;  %s1094_s27 = sld [smem:[#allocation17_spill]] }
  0x63   : > { %p22_p6 = scmp.ge.s32.totalorder %s25_s20, 4   ;;  %s1095_s15 = smov %s834_s16 }
  0x64   : > { %s1096_s16 = smov %s838_s17  ;;  %s1097_s17 = smov %s983_s11 }
  0x65   : > { %s1098_s18 = smov %s846_s19  ;;  %24 = sbr.rel (!%p22_p6) target bundleno = 14 (0xe), region = 111 }
  0x68   : > { %s1099_s19 = smov %s1094_s27 }
  0x6a   :  { %419 = vsyncpa [#allocation3], 1 }
  0x6b   :  { %421 = vsyncpa [#allocation3 + $0x1], 1 }
  0x6c   :  { %422 = vsyncpa [#allocation10], 1 }
  0x6d   :  { %424 = vsyncpa [#allocation10 + $0x1], 1 }
  0x6e   :  { %425 = vsyncpa [#allocation4], 1 }
  0x6f   :  { %427 = vsyncpa [#allocation4 + $0x1], 1 }
  0x70   :  { %428 = vsyncpa [#allocation5], 1 }
  0x71   :  { %430 = vsyncpa [#allocation5 + $0x1], 1 }
  0x72   :  { %431 = vsyncpa [#allocation6], 1 }
  0x73   :  { %433 = vsyncpa [#allocation6 + $0x1], 1 }

</bundles_post_ra>
